<compile_context>
chip_gen: v5e
topology: v5e:2x2
jax: 0.10.0
libtpu: 0.0.40
codegen_flags: <defaults>
</compile_context>

<pallas_src>
import jax
import jax.numpy as jnp
from jax import lax
from jax.experimental import pallas as pl
from jax.experimental.pallas import tpu as pltpu


def _round_up(x, m):
    return (x + m - 1) // m * m


def _norm_block_kernel(x_ref, w_ref, b_ref, o_ref):
    """One (batch, row-tile) step of Conv2d(3x3, pad pre-applied) + bias + ReLU.

    x_ref: (tile_h + 2, W + 2, Cin_pad)   bf16 halo'd input rows   (VMEM)
    w_ref: (9 * Cin_pad, Cout_pad)        bf16 (kh,kw,cin)-flattened weights
    b_ref: (1, Cout_pad)                  f32 bias
    o_ref: (tile_h * W, Cout_pad)         f32 output (lane- and sublane-dense)
    """
    hp, wp, cin_p = x_ref.shape
    tile_h, W = hp - 2, wp - 2

    x = x_ref[...]                                        # bf16

    # im2col: 9 shifted windows concatenated along the (128-aligned) lane axis.
    # Row slices (kh) are free; kw shifts are cheap XLU sublane shifts.
    cols = []
    for kh in range(3):
        for kw in range(3):
            cols.append(x[kh:kh + tile_h, kw:kw + W, :])  # (tile_h, W, Cin_pad)
    patch = jnp.concatenate(cols, axis=-1)                # (tile_h, W, 9*Cin_pad)
    # Layout-free collapse of the leading dims (lane dim stays a multiple of 128;
    # W is sublane-friendly for VGG-style spatial sizes).
    patch2d = patch.reshape(tile_h * W, 9 * cin_p)

    # Single MXU call: K = 9*Cin_pad, f32 accumulation.
    acc = jnp.dot(patch2d, w_ref[...], preferred_element_type=jnp.float32)

    acc = acc + b_ref[...]                                # f32 bias broadcast
    acc = jnp.maximum(acc, 0.0)                           # ReLU (f32 on the VPU)
    o_ref[...] = acc.astype(o_ref.dtype)


def _pick_tile_h(H, W, cin_p, cout_p, budget_bytes=8 << 20):
    """Largest divisor of H whose double-buffered in+out blocks fit the budget."""
    best = 1
    for th in range(1, H + 1):
        if H % th:
            continue
        blk = 2 * ((th + 2) * (W + 2) * cin_p * 2 + th * W * cout_p * 4)
        if blk <= budget_bytes:
            best = th
    return best


def norm_block(x_nchw, weight, bias, *, tile_h=None):
    """NormBlock forward: Conv2d(3x3, stride=1, padding=1) + ReLU.

    x_nchw: (N, Cin, H, W) f32 (PyTorch layout)
    weight: (Cout, Cin, 3, 3) f32 (PyTorch OIHW)
    bias:   (Cout,) f32
    returns (N, Cout, H, W) f32
    """
    N, Cin, H, W = x_nchw.shape
    Cout = weight.shape[0]
    cin_p = _round_up(Cin, 128)
    cout_p = _round_up(Cout, 128)

    if tile_h is None:
        tile_h = _pick_tile_h(H, W, cin_p, cout_p)
    tile_h = max(1, min(int(tile_h), H))
    while H % tile_h:                       # snap to a divisor of H
        tile_h -= 1
    T = H // tile_h

    # ---- layout prep (plain JAX glue) ----
    x_nhwc = jnp.transpose(x_nchw, (0, 2, 3, 1))                       # (N, H, W, Cin)
    x_cp = jnp.pad(x_nhwc, ((0, 0), (0, 0), (0, 0), (0, cin_p - Cin)))  # pad channels
    x_pad = jnp.pad(x_cp, ((0, 0), (1, 1), (1, 1), (0, 0)))            # spatial pad=1
    x_bf = x_pad.astype(jnp.bfloat16)
    # Materialize halo'd row tiles (1-row overlap) so BlockSpec windows are disjoint.
    x_tiles = jnp.concatenate(
        [x_bf[:, t * tile_h: t * tile_h + tile_h + 2][:, None] for t in range(T)],
        axis=1,
    ).reshape(N * T, tile_h + 2, W + 2, cin_p)

    w_hwio = jnp.transpose(weight, (2, 3, 1, 0))                       # (3,3,Cin,Cout)
    w_p = jnp.pad(w_hwio, ((0, 0), (0, 0), (0, cin_p - Cin), (0, cout_p - Cout)))
    w2d = w_p.reshape(9 * cin_p, cout_p).astype(jnp.bfloat16)          # matches im2col order
    b2d = jnp.pad(bias, (0, cout_p - Cout)).reshape(1, cout_p).astype(jnp.float32)

    # ---- VMEM budget / scheduler hints ----
    in_blk = (tile_h + 2) * (W + 2) * cin_p * 2
    w_blk = 9 * cin_p * cout_p * 2
    out_blk = tile_h * W * cout_p * 4
    need = 2 * (in_blk + w_blk + out_blk + cout_p * 4)                 # double-buffered
    vmem_limit = int(max(need + (4 << 20), 32 << 20))                  # headroom, < 64 MiB
    cost = pl.CostEstimate(
        flops=2 * N * H * W * 9 * cin_p * cout_p,
        transcendentals=0,
        bytes_accessed=int(x_tiles.size * 2 + w2d.size * 2 + b2d.size * 4
                           + N * H * W * cout_p * 4),
    )

    out = pl.pallas_call(
        _norm_block_kernel,
        out_shape=jax.ShapeDtypeStruct((N * T, tile_h * W, cout_p), jnp.float32),
        grid_spec=pltpu.PrefetchScalarGridSpec(
            num_scalar_prefetch=0,
            grid=(N, T),
            in_specs=[
                pl.BlockSpec((None, tile_h + 2, W + 2, cin_p),
                             lambda n, t: (n * T + t, 0, 0, 0)),
                pl.BlockSpec((9 * cin_p, cout_p), lambda n, t: (0, 0)),
                pl.BlockSpec((1, cout_p), lambda n, t: (0, 0)),
            ],
            out_specs=pl.BlockSpec((None, tile_h * W, cout_p),
                                   lambda n, t: (n * T + t, 0, 0)),
        ),
        compiler_params=pltpu.CompilerParams(
            dimension_semantics=("parallel", "parallel"),
            vmem_limit_bytes=vmem_limit),
        cost_estimate=cost,
    )(x_tiles, w2d, b2d)

    out = out.reshape(N, H, W, cout_p)[..., :Cout]                     # drop channel pad
    return jnp.transpose(out, (0, 3, 1, 2)).astype(x_nchw.dtype)       # back to NCHW


def _reference(x_nchw, weight, bias):
    out = lax.conv_general_dilated(
        x_nchw, weight, window_strides=(1, 1), padding=((1, 1), (1, 1)),
        dimension_numbers=("NCHW", "OIHW", "NCHW"))
    out = out + bias.reshape(1, -1, 1, 1)
    return jnp.maximum(out, 0.0)


if __name__ == "__main__":
    key = jax.random.PRNGKey(0)
    k_x, k_w, k_b = jax.random.split(key, 3)

    N, Cin, H, W = 2, 4, 16, 16
    Cout = 8

    x = jax.random.normal(k_x, (N, Cin, H, W), dtype=jnp.float32)
    weight = jax.random.normal(k_w, (Cout, Cin, 3, 3), dtype=jnp.float32) * 0.1
    bias = jax.random.normal(k_b, (Cout,), dtype=jnp.float32) * 0.1

    out = norm_block(x, weight, bias, tile_h=8)   # grid = (N=2, H_tiles=2)
    out = jax.block_until_ready(out)
    assert out.shape == (N, Cout, H, W)

    # Reference with the same bf16 rounding of x/w (kernel uses bf16 MXU inputs,
    # f32 accumulation), plus a loose sanity check against the pure-f32 reference.
    x_bf = x.astype(jnp.bfloat16).astype(jnp.float32)
    w_bf = weight.astype(jnp.bfloat16).astype(jnp.float32)
    ref_bf = jax.block_until_ready(_reference(x_bf, w_bf, bias))
    ref_f32 = jax.block_until_ready(_reference(x, weight, bias))
    assert jnp.max(jnp.abs(out - ref_bf)) < 2e-3
    assert jnp.max(jnp.abs(out - ref_f32)) < 5e-2

    print("KERNEL_OK")
</pallas_src>

<mosaic_0001>
module attributes {stable_mosaic.version = 11 : i64} {
  func.func @_norm_block_kernel(%arg0: i32, %arg1: i32, %arg2: memref<1x10x18x128xbf16, #tpu.memory_space<vmem>>, %arg3: memref<1152x128xbf16, #tpu.memory_space<vmem>>, %arg4: memref<1x128xf32, #tpu.memory_space<vmem>>, %arg5: memref<1x128x128xf32, #tpu.memory_space<vmem>>) attributes {dimension_semantics = [#tpu.dimension_semantics<parallel>, #tpu.dimension_semantics<parallel>], iteration_bounds = array<i64: 2, 2>, scalar_prefetch = 0 : i64, scratch_operands = 0 : i64, tpu.core_type = #tpu.core_type<tc>, window_params = [{transform_indices = @transform_0, window_bounds = array<i64: 1, 10, 18, 128>}, {pipeline_mode = #tpu.pipeline_mode<synchronous>, transform_indices = @transform_1, window_bounds = array<i64: 1152, 128>}, {pipeline_mode = #tpu.pipeline_mode<synchronous>, transform_indices = @transform_2, window_bounds = array<i64: 1, 128>}, {transform_indices = @transform_3, window_bounds = array<i64: 1, 128, 128>}]} {
    %c0 = arith.constant 0 : index
    %c0_0 = arith.constant 0 : index
    %c0_1 = arith.constant 0 : index
    %c0_2 = arith.constant 0 : index
    %0 = vector.load %arg2[%c0, %c0_0, %c0_1, %c0_2] : memref<1x10x18x128xbf16, #tpu.memory_space<vmem>>, vector<1x10x18x128xbf16>
    %1 = vector.shape_cast %0 : vector<1x10x18x128xbf16> to vector<10x18x128xbf16>
    %2 = vector.extract_strided_slice %1 {offsets = [0, 0, 0], sizes = [8, 16, 128], strides = [1, 1, 1]} : vector<10x18x128xbf16> to vector<8x16x128xbf16>
    %3 = vector.extract_strided_slice %1 {offsets = [0, 1, 0], sizes = [8, 16, 128], strides = [1, 1, 1]} : vector<10x18x128xbf16> to vector<8x16x128xbf16>
    %4 = vector.extract_strided_slice %1 {offsets = [0, 2, 0], sizes = [8, 16, 128], strides = [1, 1, 1]} : vector<10x18x128xbf16> to vector<8x16x128xbf16>
    %5 = vector.extract_strided_slice %1 {offsets = [1, 0, 0], sizes = [8, 16, 128], strides = [1, 1, 1]} : vector<10x18x128xbf16> to vector<8x16x128xbf16>
    %6 = vector.extract_strided_slice %1 {offsets = [1, 1, 0], sizes = [8, 16, 128], strides = [1, 1, 1]} : vector<10x18x128xbf16> to vector<8x16x128xbf16>
    %7 = vector.extract_strided_slice %1 {offsets = [1, 2, 0], sizes = [8, 16, 128], strides = [1, 1, 1]} : vector<10x18x128xbf16> to vector<8x16x128xbf16>
    %8 = vector.extract_strided_slice %1 {offsets = [2, 0, 0], sizes = [8, 16, 128], strides = [1, 1, 1]} : vector<10x18x128xbf16> to vector<8x16x128xbf16>
    %9 = vector.extract_strided_slice %1 {offsets = [2, 1, 0], sizes = [8, 16, 128], strides = [1, 1, 1]} : vector<10x18x128xbf16> to vector<8x16x128xbf16>
    %10 = vector.extract_strided_slice %1 {offsets = [2, 2, 0], sizes = [8, 16, 128], strides = [1, 1, 1]} : vector<10x18x128xbf16> to vector<8x16x128xbf16>
    %11 = tpu.concatenate %2, %3, %4, %5, %6, %7, %8, %9, %10 in 2 : vector<8x16x128xbf16>, vector<8x16x128xbf16>, vector<8x16x128xbf16>, vector<8x16x128xbf16>, vector<8x16x128xbf16>, vector<8x16x128xbf16>, vector<8x16x128xbf16>, vector<8x16x128xbf16>, vector<8x16x128xbf16> -> vector<8x16x1152xbf16>
    %12 = vector.shape_cast %11 : vector<8x16x1152xbf16> to vector<128x1152xbf16>
    %c0_3 = arith.constant 0 : index
    %c0_4 = arith.constant 0 : index
    %13 = vector.load %arg3[%c0_3, %c0_4] : memref<1152x128xbf16, #tpu.memory_space<vmem>>, vector<1152x128xbf16>
    %cst = arith.constant dense<0.000000e+00> : vector<128x128xf32>
    %14 = tpu.matmul %12, %13, %cst {dimension_numbers = #tpu.dot_dimension_numbers<[1], [0], [0], [1], [0, 0, 1, 1], [], []>} : vector<128x1152xbf16>, vector<1152x128xbf16>, vector<128x128xf32> -> vector<128x128xf32>
    %c0_5 = arith.constant 0 : index
    %c0_6 = arith.constant 0 : index
    %15 = vector.load %arg4[%c0_5, %c0_6] : memref<1x128xf32, #tpu.memory_space<vmem>>, vector<1x128xf32>
    %16 = vector.broadcast %15 : vector<1x128xf32> to vector<128x128xf32>
    %17 = arith.addf %14, %16 : vector<128x128xf32>
    %cst_7 = arith.constant 0.000000e+00 : f32
    %18 = vector.broadcast %cst_7 : f32 to vector<128x128xf32>
    %19 = arith.maximumf %17, %18 : vector<128x128xf32>
    %c0_8 = arith.constant 0 : index
    %c0_9 = arith.constant 0 : index
    %c0_10 = arith.constant 0 : index
    %20 = vector.load %arg5[%c0_8, %c0_9, %c0_10] : memref<1x128x128xf32, #tpu.memory_space<vmem>>, vector<1x128x128xf32>
    %21 = vector.shape_cast %20 : vector<1x128x128xf32> to vector<128x128xf32>
    %22 = vector.shape_cast %19 : vector<128x128xf32> to vector<1x128x128xf32>
    tpu.vector_store %arg5[%c0_8, %c0_9, %c0_10], %22 {strides = array<i32>} : memref<1x128x128xf32, #tpu.memory_space<vmem>>, vector<1x128x128xf32>,
    return
  }
  func.func @transform_0(%arg0: i32, %arg1: i32) -> (i32, i32, i32, i32) {
    %c2_i32 = arith.constant 2 : i32
    %0 = arith.muli %arg0, %c2_i32 : i32
    %1 = arith.addi %0, %arg1 : i32
    %c0_i32 = arith.constant 0 : i32
    %c0_i32_0 = arith.constant 0 : i32
    %c0_i32_1 = arith.constant 0 : i32
    %c0_i32_2 = arith.constant 0 : i32
    return %1, %c0_i32, %c0_i32_0, %c0_i32_1 : i32, i32, i32, i32
  }
  func.func @transform_1(%arg0: i32, %arg1: i32) -> (i32, i32) {
    %c0_i32 = arith.constant 0 : i32
    %c0_i32_0 = arith.constant 0 : i32
    %c0_i32_1 = arith.constant 0 : i32
    return %c0_i32, %c0_i32_0 : i32, i32
  }
  func.func @transform_2(%arg0: i32, %arg1: i32) -> (i32, i32) {
    %c0_i32 = arith.constant 0 : i32
    %c0_i32_0 = arith.constant 0 : i32
    %c0_i32_1 = arith.constant 0 : i32
    return %c0_i32, %c0_i32_0 : i32, i32
  }
  func.func @transform_3(%arg0: i32, %arg1: i32) -> (i32, i32, i32) {
    %c2_i32 = arith.constant 2 : i32
    %0 = arith.muli %arg0, %c2_i32 : i32
    %1 = arith.addi %0, %arg1 : i32
    %c0_i32 = arith.constant 0 : i32
    %c0_i32_0 = arith.constant 0 : i32
    %c0_i32_1 = arith.constant 0 : i32
    return %1, %c0_i32, %c0_i32_0 : i32, i32, i32
  }
}

</mosaic_0001>

<bundles_post_ra>
// kernel: tpu_custom_call.1
= control target key start
LH: loop header
LB: loop body
LE: loop exit
PB: predicated region body
PF: predicated region fallthrough
CT: control target
= control target key end

     0   :  { %8 = vsyncpa [#allocation3], 0  ;;  %s2938_s0 = inlined_call_operand.vmem [shape: bf16[4,10,18,128], index: 0, kind: input, shape index: {}]   ;;  %s2939_s1 = inlined_call_operand.vmem [shape: bf16[1152,128], index: 1, kind: input, shape index: {}]   ;;  %s2940_s2 = inlined_call_operand.vmem [shape: f32[1,128], index: 2, kind: input, shape index: {}]   ;;  %s2941_s3 = inlined_call_operand.hbm [shape: f32[4,128,128], index: 3, kind: output, shape index: {}]  }
   0x1   :  { %10 = vsyncpa [#allocation3 + $0x1], 0  ;;  %s2285_s12 = smov 0   ;;  %s2287_s13 = smov 0  }
   0x2   :  { %s2289_s14 = smov 0   ;;  %s2291_s15 = smov 0  }
   0x3   :  { %s2293_s16 = smov 0   ;;  %s2295_s17 = smov 0  }
   0x4   :  { %s2297_s18 = smov 0   ;;  %s2299_s19 = smov 0  }
   0x5 LB: > { %s1639_s20 = sadd.s32 4294967295, %s2261_s19   ;;  %s25_s21 = sadd.s32 1, %s2253_s17  ;;  %s2261_s19 = sphi %s2299_s19, %s16_s19   ;;  %s2257_s18 = sphi %s2297_s18, %s2950_s18   ;;  %s2253_s17 = sphi %s2295_s17, %s2949_s17   ;;  %s2249_s16 = sphi %s2293_s16, %s2948_s16   ;;  %s2245_s15 = sphi %s2291_s15, %s2947_s15   ;;  %s2241_s14 = sphi %s2289_s14, %s2946_s14   ;;  %s2237_s13 = sphi %s2287_s13, %s2945_s13   ;;  %s2233_s12 = sphi %s2285_s12, %s2944_s12  }
   0x6   : > { %s28_s22 = sadd.s32 1, %s2257_s18  ;;  %p26_p0 = scmp.ge.s32.totalorder %s25_s21, 2 }
   0x7   : > { %s1643_s23 = sshll.u32 %s2257_s18, 1  ;;  %s1640_s24 = sadd.s32 4294967294, %s2261_s19  }
   0x8   : > { %s105_s25 = sadd.s32 %s2253_s17, %s1643_s23  ;;  %s2952_s21 = smov (%p26_p0, %s25_s21), 0 }
   0x9   : > { %s2954_s22 = smov (!%p26_p0, %s28_s22), %s2257_s18  ;;  %p121_p1 = scmp.ne.s32.totalorder %s2241_s14, %s2237_s13 }
   0xa   : > { %p122_p2 = scmp.eq.s32.totalorder %s1639_s20, 3  ;;  %p30_p3 = scmp.ge.s32.totalorder %s2954_s22, 2 }
   0xb   : > { %p127_p4 = scmp.ne.s32.totalorder %s2237_s13, %s2233_s12  ;;  %p128_p6 = scmp.eq.s32.totalorder %s1640_s24, 3 }
   0xc   : > { %p2338_p5 = por %p122_p2, %p121_p1  ;;  %s2956_s22 = smov (%p30_p3, %s2954_s22), 0 }
   0xd   : > { %p2344_p7 = por %p128_p6, %p127_p4  ;;  %p1647_p8 = scmp.ge.s32.totalorder %s2261_s19, 1 }
   0xe   : > { %s1644_s28 = sshll.u32 %s2956_s22, 1  ;;  %p164_p9 = scmp.lt.s32.totalorder %s2261_s19, 5 }
   0xf   : > { %s107_s29 = sadd.s32 %s1644_s28, %s2952_s21  ;;  %s111_s30 = sadd.s32 1, %s2241_s14 }
  0x10   : > { %s108_s4 = ssub.s32 %s105_s25, %s107_s29  ;;  %p165_p10 = pnand %p1647_p8, %p164_p9 }
  0x11   : > { %p109_p11 = scmp.eq.s32.totalorder %s108_s4, 0  ;;  %s1649_s20 = sshll.u32 (!%p165_p10), %s2249_s16, 1 }
  0x12   : > { %168 = sbr.rel (%p165_p10) target bundleno = 479 (0x1df), region = 32  ;;  %s2370_s25 = sadd.s32 (!%p165_p10), %s2245_s15, %s1649_s20 }
  0x13   : > { %s2354_s5 = scalar_select %p109_p11, %s2241_s14, %s111_s30  }
  0x14   : > { %p192_p12 = scmp.lt.s32.totalorder (!%p165_p10), %s2370_s25, 3  ;;  %s2187_s28 = scalar_lea.hbm (!%p165_p10), %s2941_s3, 512 }
  0x17   : > { %v2002_v0 = vld [vmem:[%s2939_s1 + $0x38] sm:$0xff]  ;;  %v2001_v1 = vld [vmem:[%s2939_s1 + $0x30] sm:$0xff]  ;;  %v2000_v2 = vld [vmem:[%s2939_s1 + $0x28] sm:$0xff]  ;;  %s193_s4 = scalar_select %p192_p12, %s2370_s25, 3  ;;  %vm303_vm0 = vsmask.f32 7424 }
  0x18   : > { %2068 = vmatpush.bf16.msra.mxu1 %v2002_v0  ;;  %2069 = vmatpush.bf16.msra.mxu2 %v2002_v0  ;;  %v1999_v3 = vld [vmem:[%s2939_s1 + $0x20] sm:$0xff]  ;;  %v1998_v4 = vld [vmem:[%s2939_s1 + $0x18] sm:$0xff]  ;;  %v1997_v5 = vld [vmem:[%s2939_s1 + $0x10] sm:$0xff]  ;;  %vm408_vm1 = vcmask 1046528  }
  0x19   : > { %2070 = vmatpush.bf16.msra.mxu3 %v2002_v0  ;;  %1073 = vmatpush.bf16.msra.mxu0 %v2002_v0  ;;  %v1996_v6 = vld [vmem:[%s2939_s1 + $0x8] sm:$0xff]  ;;  %s2092_s7 = smul.u32 120, %s193_s4  ;;  %v1995_v7 = vld [vmem:[%s2939_s1] sm:$0xff]  ;;  %v2018_v8 = vld [vmem:[%s2939_s1 + $0xb8] sm:$0xff]  ;;  %s2067_s4 = sshll.u32 %s2370_s25, 7 }
  0x1a   : > { %v2010_v9 = vld [vmem:[%s2939_s1 + $0x78] sm:$0xff]  ;;  %v2017_v16 = vld [vmem:[%s2939_s1 + $0xb0] sm:$0xff]  ;;  %v2016_v20 = vld [vmem:[%s2939_s1 + $0xa8] sm:$0xff] }
  0x1b   : > { %s2389_s20 = scalar_lea.vmem %s2938_s0, %s2092_s7  ;;  %v2026_v14 = vld [vmem:[%s2939_s1 + $0xf8] sm:$0xff]  ;;  %v2009_v17 = vld [vmem:[%s2939_s1 + $0x70] sm:$0xff]  ;;  %v2008_v21 = vld [vmem:[%s2939_s1 + $0x68] sm:$0xff]  ;;  %s1560_s7 = scalar_lea.hbm %s2941_s3, %s2067_s4 }
  0x1c   : > { %2071 = vmatpush.bf16.msra.mxu1 %v2001_v1  ;;  %2072 = vmatpush.bf16.msra.mxu2 %v2001_v1  ;;  %v2398_v10 = vld [vmem:[%s2389_s20 + $0x18] sm:$0xff]  ;;  %v2401_v11 = vld [vmem:[%s2389_s20 + $0x30] sm:$0xff]  ;;  %v2404_v12 = vld [vmem:[%s2389_s20 + $0x48] sm:$0xff]  ;;  %s1563_s9 = sshll.u32 %s1560_s7, 4  ;;  %s1564_s9 = int_to_ptr.hbm [resolvable:$true] %s1563_s9 }
  0x1d   : > { %2073 = vmatpush.bf16.msra.mxu3 %v2001_v1  ;;  %1074 = vmatpush.bf16.msra.mxu0 %v2001_v1  ;;  %v2407_v13 = vld [vmem:[%s2389_s20] sm:$0xff]  ;;  %v2034_v15 = vld [vmem:[%s2939_s1 + $0x138] sm:$0xff]  ;;  %v2025_v18 = vld [vmem:[%s2939_s1 + $0xf0] sm:$0xff]  ;;  %s2181_s10 = sshra.s32 %s1564_s9, 4  ;;  %s2182_s10 = int_to_ptr.hbm [resolvable:$true] %s2181_s10 }
  0x1e   : > { %v2033_v19 = vld [vmem:[%s2939_s1 + $0x130] sm:$0xff]  ;;  %v2024_v22 = vld [vmem:[%s2939_s1 + $0xe8] sm:$0xff]  ;;  %v2015_v24 = vld [vmem:[%s2939_s1 + $0xa0] sm:$0xff]  ;;  %v307_v43 = vshll.u32 %v2407_v13, 16  ;;  %v305_v50 = vshrl.u32 %v2407_v13, 16  ;;  %v409_v0 = vrot.slane %v2407_v13, 1  ;;  %p2188_p2 = scmp.lt.s32.totalorder %s2182_s10, %s2941_s3 }
  0x1f   : > { %v2032_v23 = vld [vmem:[%s2939_s1 + $0x128] sm:$0xff]  ;;  %v2007_v25 = vld [vmem:[%s2939_s1 + $0x60] sm:$0xff]  ;;  %v2014_v29 = vld [vmem:[%s2939_s1 + $0x98] sm:$0xff]  ;;  %s2183_s11 = scalar_lea.hbm %s2182_s10, 128 }
  0x20   : > { %2074 = vmatpush.bf16.msra.mxu1 %v2000_v2  ;;  %2075 = vmatpush.bf16.msra.mxu2 %v2000_v2  ;;  %v2023_v26 = vld [vmem:[%s2939_s1 + $0xe0] sm:$0xff]  ;;  %v203_v28 = vld [vmem:[%s2389_s20 + $0x8] sm:$0x1]  ;;  %v2006_v30 = vld [vmem:[%s2939_s1 + $0x58] sm:$0xff]  ;;  %v309_v51 = vrot.slane %v307_v43, 1  ;;  %p2184_p13 = scmp.ne.s32.totalorder %s2182_s10, %s2183_s11  ;;  %p2189_p3 = scmp.lt.s32.totalorder %s2187_s28, %s2183_s11 }
  0x21   : > { %2076 = vmatpush.bf16.msra.mxu3 %v2000_v2  ;;  %1075 = vmatpush.bf16.msra.mxu0 %v2000_v2  ;;  %v2031_v27 = vld [vmem:[%s2939_s1 + $0x120] sm:$0xff]  ;;  %v206_v31 = vld [vmem:[%s2389_s20 + $0x14] sm:$0x1]  ;;  %v2473_v35 = vld [vmem:[%s2389_s20 + $0xc] sm:$0xff]  ;;  %v287_v36 = vunpack.c.l.b16 %v203_v28 }
  0x22   : > { %v2464_v32 = vld [vmem:[%s2389_s20 + $0x24] sm:$0xff]  ;;  %v2467_v33 = vld [vmem:[%s2389_s20 + $0x3c] sm:$0xff]  ;;  %v2470_v34 = vld [vmem:[%s2389_s20 + $0x54] sm:$0xff]  ;;  %v288_v39 = vunpack.c.l.b16 %v206_v31  ;;  %v319_v47 = vshll.u32 %v2473_v35, 16  ;;  %v317_v55 = vshrl.u32 %v2473_v35, 16  ;;  %v310_v62 = vor.u32 %v309_v51, %v305_v50  ;;  %p2185_p0 = pnand %p2184_p13, %p2338_p5  ;;  %p2190_p4 = por %p2189_p3, %p2188_p2 }
  0x23   : > { %v2022_v37 = vld [vmem:[%s2939_s1 + $0xd8] sm:$0xff]  ;;  %v2013_v40 = vld [vmem:[%s2939_s1 + $0x90] sm:$0xff]  ;;  %v295_v42 = vpack.c.b16 %v287_v36, %v287_v36  ;;  %v2012_v48 = vld [vmem:[%s2939_s1 + $0x88] sm:$0xff] }
  0x24   : > { %2077 = vmatpush.bf16.msra.mxu1 %v1999_v3  ;;  %2078 = vmatpush.bf16.msra.mxu2 %v1999_v3  ;;  %v2030_v38 = vld [vmem:[%s2939_s1 + $0x118] sm:$0xff]  ;;  %v2005_v41 = vld [vmem:[%s2939_s1 + $0x50] sm:$0xff]  ;;  %v2498_v46 = vpack.c.b16 %v288_v39, %v288_v39  ;;  %v2004_v49 = vld [vmem:[%s2939_s1 + $0x48] sm:$0xff]  ;;  %v321_v56 = vrot.slane %v319_v47, 1  ;;  %p2186_p1 = pneg %p2185_p0 }
  0x25   : > { %2079 = vmatpush.bf16.msra.mxu3 %v1999_v3  ;;  %1076 = vmatpush.bf16.msra.mxu0 %v1999_v3  ;;  %v2021_v44 = vld [vmem:[%s2939_s1 + $0xd0] sm:$0xff]  ;;  %v312_v52 = vshll.u32 %v295_v42, 16  ;;  %v2020_v53 = vld [vmem:[%s2939_s1 + $0xc8] sm:$0xff]  ;;  %v2011_v58 = vld [vmem:[%s2939_s1 + $0x80] sm:$0xff]  ;;  %v410_v1 = vrot.slane %v295_v42, 1 }
  0x26   : > { %v2029_v45 = vld [vmem:[%s2939_s1 + $0x110] sm:$0xff]  ;;  %v2028_v54 = vld [vmem:[%s2939_s1 + $0x108] sm:$0xff]  ;;  %v324_v57 = vshll.u32 %v2498_v46, 16  ;;  %v2003_v59 = vld [vmem:[%s2939_s1 + $0x40] sm:$0xff]  ;;  %p2191_p6 = pnand %p2190_p4, %p2186_p1 }
  0x27   : > { %v2050_v60 = vld [vmem:[%s2939_s1 + $0x1b8] sm:$0xff]  ;;  %v314_v63 = vrot.slane %v312_v52, 1  ;;  %v2019_v2 = vld [vmem:[%s2939_s1 + $0xc0] sm:$0xff] }
  0x28   : > { %2080 = vmatpush.bf16.msra.mxu1 %v1998_v4  ;;  %2081 = vmatpush.bf16.msra.mxu2 %v1998_v4  ;;  %v2042_v61 = vld [vmem:[%s2939_s1 + $0x178] sm:$0xff]  ;;  %v2027_v3 = vld [vmem:[%s2939_s1 + $0x100] sm:$0xff] }
  0x29   : > { %2082 = vmatpush.bf16.msra.mxu3 %v1998_v4  ;;  %1077 = vmatpush.bf16.msra.mxu0 %v1998_v4  ;;  %v322_v4 = vor.u32 %v321_v56, %v317_v55  ;;  %v2039_v42 = vld [vmem:[%s2939_s1 + $0x160] sm:$0xff] }
  0x2c   : > { %2083 = vmatpush.bf16.msra.mxu1 %v1997_v5  ;;  %2084 = vmatpush.bf16.msra.mxu2 %v1997_v5 }
  0x2d   : > { %2085 = vmatpush.bf16.msra.mxu3 %v1997_v5  ;;  %1078 = vmatpush.bf16.msra.mxu0 %v1997_v5  ;;  %v326_v5 = vrot.slane %v324_v57, 1  ;;  %v2046_v57 = vld [vmem:[%s2939_s1 + $0x198] sm:$0xff] }
  0x30   : > { %2086 = vmatpush.bf16.msra.mxu1 %v1996_v6  ;;  %2087 = vmatpush.bf16.msra.mxu2 %v1996_v6 }
  0x31   : > { %2088 = vmatpush.bf16.msra.mxu3 %v1996_v6  ;;  %1079 = vmatpush.bf16.msra.mxu0 %v1996_v6  ;;  %v2058_v6 = vld [vmem:[%s2939_s1 + $0x1f8] sm:$0xff] }
  0x34   : > { %2089 = vmatpush.bf16.msra.mxu1 %v1995_v7  ;;  %2090 = vmatpush.bf16.msra.mxu2 %v1995_v7 }
  0x35   : > { %2091 = vmatpush.bf16.msra.mxu3 %v1995_v7  ;;  %1080 = vmatpush.bf16.msra.mxu0 %v1995_v7  ;;  %v2066_v7 = vld [vmem:[%s2939_s1 + $0x238] sm:$0xff] }
  0x37   : > { %1091 = vmatmul.bf16.vlgmr.msra.gmra.mxu1 %v2398_v10  ;;  %1101 = vmatmul.bf16.vlgmr.msra.gmra.mxu2 %v2401_v11 }
  0x38   : > { %1171 = vmatpush.bf16.msrb.mxu2 %v2018_v8  ;;  %1122 = vmatpush.bf16.msrb.mxu1 %v2010_v9  ;;  %v209_v8 = vld [vmem:[%s2389_s20 + $0x20] sm:$0x1]  ;;  %v315_v9 = vsel %vm303_vm0, %v310_v62, %v314_v63  ;;  %v2062_v62 = vld [vmem:[%s2939_s1 + $0x218] sm:$0xff]  ;;  %v353_v63 = vshrl.u32 %v2401_v11, 16 }
  0x39   : > { %1111 = vmatmul.bf16.vlgmr.msra.gmra.mxu3 %v2404_v12  ;;  %1081 = vmatmul.bf16.vlgmr.msra.gmra.mxu0 %v2407_v13  ;;  %v411_v13 = vsel %vm408_vm1, %v409_v0, %v410_v1 }
  0x3a   : > { %1220 = vmatpush.bf16.msrb.mxu3 %v2026_v14  ;;  %1269 = vmatpush.bf16.msrb.mxu0 %v2034_v15  ;;  %v327_v14 = vsel %vm303_vm0, %v322_v4, %v326_v5  ;;  %v2049_v15 = vld [vmem:[%s2939_s1 + $0x1b0] sm:$0xff] }
  0x3c   : > { %1172 = vmatpush.bf16.msrb.mxu2 %v2017_v16  ;;  %1123 = vmatpush.bf16.msrb.mxu1 %v2009_v17  ;;  %v289_v16 = vunpack.c.l.b16 %v209_v8  ;;  %v2041_v17 = vld [vmem:[%s2939_s1 + $0x170] sm:$0xff] }
  0x3e   : > { %1221 = vmatpush.bf16.msrb.mxu3 %v2025_v18  ;;  %1270 = vmatpush.bf16.msrb.mxu0 %v2033_v19  ;;  %v2057_v18 = vld [vmem:[%s2939_s1 + $0x1f0] sm:$0xff] }
  0x3f   : > { %v2065_v19 = vld [vmem:[%s2939_s1 + $0x230] sm:$0xff] }
  0x40   : > { %1173 = vmatpush.bf16.msrb.mxu2 %v2016_v20  ;;  %1124 = vmatpush.bf16.msrb.mxu1 %v2008_v21  ;;  %v297_v20 = vpack.c.b16 %v289_v16, %v289_v16  ;;  %v331_v21 = vshll.u32 %v2398_v10, 16 }
  0x42   : > { %1222 = vmatpush.bf16.msrb.mxu3 %v2024_v22  ;;  %1271 = vmatpush.bf16.msrb.mxu0 %v2032_v23  ;;  %v2048_v22 = vld [vmem:[%s2939_s1 + $0x1a8] sm:$0xff]  ;;  %v336_v28 = vshll.u32 %v297_v20, 16  ;;  %v416_v50 = vrot.slane %v297_v20, 1 }
  0x43   : > { %v2040_v23 = vld [vmem:[%s2939_s1 + $0x168] sm:$0xff] }
  0x44   : > { %1174 = vmatpush.bf16.msrb.mxu2 %v2015_v24  ;;  %1125 = vmatpush.bf16.msrb.mxu1 %v2007_v25  ;;  %v2056_v24 = vld [vmem:[%s2939_s1 + $0x1e8] sm:$0xff]  ;;  %v338_v36 = vrot.slane %v336_v28, 1 }
  0x45   : > { %v2064_v25 = vld [vmem:[%s2939_s1 + $0x228] sm:$0xff] }
  0x46   : > { %1223 = vmatpush.bf16.msrb.mxu3 %v2023_v26  ;;  %1272 = vmatpush.bf16.msrb.mxu0 %v2031_v27  ;;  %v329_v26 = vshrl.u32 %v2398_v10, 16  ;;  %v333_v27 = vrot.slane %v331_v21, 1 }
  0x47   : > { %1096 = vmatmul.bf16.gmra.mxu1 %v2464_v32  ;;  %1106 = vmatmul.bf16.gmra.mxu2 %v2467_v33 }
  0x48   : > { %1175 = vmatpush.bf16.msrb.mxu2 %v2014_v29  ;;  %1126 = vmatpush.bf16.msrb.mxu1 %v2006_v30  ;;  %v412_v29 = vrot.slane %v2473_v35, 1  ;;  %v413_v30 = vrot.slane %v2498_v46, 1  ;;  %v334_v31 = vor.u32 %v333_v27, %v329_v26  ;;  %v341_v46 = vshrl.u32 %v2464_v32, 16  ;;  %v221_v26 = vld [vmem:[%s2389_s20 + $0x50] sm:$0x1] }
  0x49   : > { %1116 = vmatmul.bf16.gmra.mxu3 %v2470_v34  ;;  %1086 = vmatmul.bf16.gmra.mxu0 %v2473_v35 }
  0x4a   : > { %1224 = vmatpush.bf16.msrb.mxu3 %v2022_v37  ;;  %1273 = vmatpush.bf16.msrb.mxu0 %v2030_v38  ;;  %v212_v37 = vld [vmem:[%s2389_s20 + $0x2c] sm:$0x1]  ;;  %v2576_v38 = vsel %vm408_vm1, %v412_v29, %v413_v30  ;;  %v2579_v39 = vsel %vm303_vm0, %v334_v31, %v338_v36  ;;  %v293_v29 = vunpack.c.l.b16 %v221_v26 }
  0x4b   : > { %v2044_v30 = vld [vmem:[%s2939_s1 + $0x188] sm:$0xff] }
  0x4c   : > { %1176 = vmatpush.bf16.msrb.mxu2 %v2013_v40  ;;  %1127 = vmatpush.bf16.msrb.mxu1 %v2005_v41  ;;  %v290_v40 = vunpack.c.l.b16 %v212_v37  ;;  %v2055_v41 = vld [vmem:[%s2939_s1 + $0x1e0] sm:$0xff]  ;;  %v2052_v31 = vld [vmem:[%s2939_s1 + $0x1c8] sm:$0xff]  ;;  %v301_v36 = vpack.c.b16 %v293_v29, %v293_v29  ;;  %v379_v37 = vshll.u32 %v2404_v12, 16  ;;  %v430_v29 = vrot.slane %v2470_v34, 1 }
  0x4e   : > { %1225 = vmatpush.bf16.msrb.mxu3 %v2021_v44  ;;  %1274 = vmatpush.bf16.msrb.mxu0 %v2029_v45  ;;  %v298_v43 = vpack.c.b16 %v290_v40, %v290_v40  ;;  %v343_v44 = vshll.u32 %v2464_v32, 16  ;;  %v2063_v45 = vld [vmem:[%s2939_s1 + $0x220] sm:$0xff]  ;;  %v2036_v40 = vld [vmem:[%s2939_s1 + $0x148] sm:$0xff] }
  0x50   : > { %1177 = vmatpush.bf16.msrb.mxu2 %v2012_v48  ;;  %1128 = vmatpush.bf16.msrb.mxu1 %v2004_v49  ;;  %v345_v47 = vrot.slane %v343_v44, 1  ;;  %v348_v48 = vshll.u32 %v298_v43, 16  ;;  %v415_v49 = vrot.slane %v2398_v10, 1  ;;  %v424_v44 = vrot.slane %v2467_v33, 1 }
  0x52   : > { %1226 = vmatpush.bf16.msrb.mxu3 %v2020_v53  ;;  %1275 = vmatpush.bf16.msrb.mxu0 %v2028_v54  ;;  %v346_v51 = vor.u32 %v345_v47, %v341_v46  ;;  %v350_v52 = vrot.slane %v348_v48, 1  ;;  %v215_v53 = vld [vmem:[%s2389_s20 + $0x38] sm:$0x1]  ;;  %v2601_v54 = vsel %vm408_vm1, %v415_v49, %v416_v50  ;;  %v224_v48 = vld [vmem:[%s2389_s20 + $0x5c] sm:$0x1] }
  0x53   : > { %v291_v56 = vunpack.c.l.b16 %v215_v53  ;;  %v2051_v53 = vld [vmem:[%s2939_s1 + $0x1c0] sm:$0xff] }
  0x54   : > { %1178 = vmatpush.bf16.msrb.mxu2 %v2011_v58  ;;  %1129 = vmatpush.bf16.msrb.mxu1 %v2003_v59  ;;  %v2604_v55 = vsel %vm303_vm0, %v346_v51, %v350_v52  ;;  %v2054_v58 = vld [vmem:[%s2939_s1 + $0x1d8] sm:$0xff]  ;;  %v294_v51 = vunpack.c.l.b16 %v224_v48  ;;  %v2043_v52 = vld [vmem:[%s2939_s1 + $0x180] sm:$0xff] }
  0x55   : > { %v2038_v59 = vld [vmem:[%s2939_s1 + $0x158] sm:$0xff] }
  0x56   : > { %1227 = vmatpush.bf16.msrb.mxu3 %v2019_v2  ;;  %1276 = vmatpush.bf16.msrb.mxu0 %v2027_v3  ;;  %v418_v2 = vrot.slane %v2464_v32, 1  ;;  %v419_v3 = vrot.slane %v298_v43, 1  ;;  %v2060_v43 = vld [vmem:[%s2939_s1 + $0x208] sm:$0xff] }
  0x57   : > { %1130 = vmatmul.bf16.vlgmr.msrb.gmra.mxu1 %v315_v9  ;;  %1179 = vmatmul.bf16.vlgmr.msrb.gmra.mxu2 %v411_v13  ;;  %v2045_v13 = vld [vmem:[%s2939_s1 + $0x190] sm:$0xff] }
  0x58   : > { %1367 = vmatpush.bf16.msra.mxu2 %v2050_v60  ;;  %1318 = vmatpush.bf16.msra.mxu1 %v2042_v61  ;;  %v299_v60 = vpack.c.b16 %v291_v56, %v291_v56  ;;  %v355_v61 = vshll.u32 %v2401_v11, 16  ;;  %v302_v56 = vpack.c.b16 %v294_v51, %v294_v51 }
  0x59   : > { %1228 = vmatmul.bf16.vlgmr.msrb.gmra.mxu3 %v2473_v35  ;;  %1277 = vmatmul.bf16.vlgmr.msrb.gmra.mxu0 %v327_v14  ;;  %v2047_v35 = vld [vmem:[%s2939_s1 + $0x1a0] sm:$0xff] }
  0x5a   : > { %1416 = vmatpush.bf16.msra.mxu3 %v2058_v6  ;;  %1465 = vmatpush.bf16.msra.mxu0 %v2066_v7  ;;  %v357_v0 = vrot.slane %v355_v61, 1  ;;  %v360_v1 = vshll.u32 %v299_v60, 16  ;;  %v218_v6 = vld [vmem:[%s2389_s20 + $0x44] sm:$0x1]  ;;  %v2627_v7 = vsel %vm408_vm1, %v418_v2, %v419_v3  ;;  %v396_v61 = vshll.u32 %v302_v56, 16 }
  0x5b   : > { %v292_v9 = vunpack.c.l.b16 %v218_v6  ;;  %v227_v3 = vld [vmem:[%s2389_s20 + $0x68] sm:$0x1] }
  0x5c   : > { %1368 = vmatpush.bf16.msra.mxu2 %v2049_v15  ;;  %1319 = vmatpush.bf16.msra.mxu1 %v2041_v17  ;;  %v358_v4 = vor.u32 %v357_v0, %v353_v63  ;;  %v362_v5 = vrot.slane %v360_v1, 1  ;;  %v2037_v15 = vld [vmem:[%s2939_s1 + $0x150] sm:$0xff]  ;;  %v367_v17 = vshll.u32 %v2467_v33, 16  ;;  %v427_v63 = vrot.slane %v2404_v12, 1 }
  0x5d   : > { %v300_v16 = vpack.c.b16 %v292_v9, %v292_v9  ;;  %v428_v0 = vrot.slane %v301_v36, 1  ;;  %v398_v2 = vrot.slane %v396_v61, 1 }
  0x5e   : > { %1417 = vmatpush.bf16.msra.mxu3 %v2057_v18  ;;  %1466 = vmatpush.bf16.msra.mxu0 %v2065_v19  ;;  %v2630_v8 = vsel %vm303_vm0, %v358_v4, %v362_v5  ;;  %v2061_v18 = vld [vmem:[%s2939_s1 + $0x210] sm:$0xff]  ;;  %v365_v19 = vshrl.u32 %v2467_v33, 16  ;;  %v369_v20 = vrot.slane %v367_v17, 1 }
  0x5f   : > { %v372_v21 = vshll.u32 %v300_v16, 16  ;;  %v2707_v5 = vsel %vm408_vm1, %v427_v63, %v428_v0 }
  0x60   : > { %1369 = vmatpush.bf16.msra.mxu2 %v2048_v22  ;;  %1320 = vmatpush.bf16.msra.mxu1 %v2040_v23  ;;  %v421_v22 = vrot.slane %v2401_v11, 1  ;;  %v422_v23 = vrot.slane %v299_v60, 1 }
  0x62   : > { %1418 = vmatpush.bf16.msra.mxu3 %v2056_v24  ;;  %1467 = vmatpush.bf16.msra.mxu0 %v2064_v25  ;;  %v370_v24 = vor.u32 %v369_v20, %v365_v19  ;;  %v374_v25 = vrot.slane %v372_v21, 1  ;;  %v2653_v27 = vsel %vm408_vm1, %v421_v22, %v422_v23 }
  0x64   : > { %1370 = vmatpush.bf16.msra.mxu2 %v2047_v35  ;;  %1321 = vmatpush.bf16.msra.mxu1 %v2039_v42  ;;  %v2656_v28 = vsel %vm303_vm0, %v370_v24, %v374_v25  ;;  %v377_v35 = vshrl.u32 %v2404_v12, 16  ;;  %v384_v42 = vshll.u32 %v301_v36, 16 }
  0x66   : > { %1419 = vmatpush.bf16.msra.mxu3 %v2055_v41  ;;  %1468 = vmatpush.bf16.msra.mxu0 %v2063_v45  ;;  %v381_v41 = vrot.slane %v379_v37, 1  ;;  %v425_v45 = vrot.slane %v300_v16, 1  ;;  %v386_v47 = vrot.slane %v384_v42, 1 }
  0x67   : > { %1135 = vmatmul.bf16.gmra.mxu1 %v327_v14  ;;  %1184 = vmatmul.bf16.gmra.mxu2 %v2576_v38  ;;  %v2053_v14 = vld [vmem:[%s2939_s1 + $0x1d0] sm:$0xff] }
  0x68   : > { %1371 = vmatpush.bf16.msra.mxu2 %v2046_v57  ;;  %1322 = vmatpush.bf16.msra.mxu1 %v2038_v59  ;;  %v382_v46 = vor.u32 %v381_v41, %v377_v35  ;;  %v2679_v49 = vsel %vm408_vm1, %v424_v44, %v425_v45  ;;  %v391_v57 = vshll.u32 %v2470_v34, 16  ;;  %v389_v59 = vshrl.u32 %v2470_v34, 16 }
  0x69   : > { %1233 = vmatmul.bf16.gmra.mxu3 %v2398_v10  ;;  %1282 = vmatmul.bf16.gmra.mxu0 %v2579_v39 }
  0x6a   : > { %1420 = vmatpush.bf16.msra.mxu3 %v2054_v58  ;;  %1469 = vmatpush.bf16.msra.mxu0 %v2062_v62  ;;  %v2682_v50 = vsel %vm303_vm0, %v382_v46, %v386_v47  ;;  %v2035_v58 = vld [vmem:[%s2939_s1 + $0x140] sm:$0xff]  ;;  %v393_v60 = vrot.slane %v391_v57, 1 }
  0x6b   : > { %v2059_v62 = vld [vmem:[%s2939_s1 + $0x200] sm:$0xff] }
  0x6c   : > { %1372 = vmatpush.bf16.msra.mxu2 %v2045_v13  ;;  %1323 = vmatpush.bf16.msra.mxu1 %v2037_v15  ;;  %v394_v1 = vor.u32 %v393_v60, %v389_v59  ;;  %v2713_v13 = vld [vmem:[%s2389_s20 + $0x60] sm:$0xff] }
  0x6d   : > { %v2722_v15 = vld [vmem:[%s2940_s2] ss:$0 sm:$0xff]  ;;  %v453_v17 = vshll.u32 %v2713_v13, 16  ;;  %v451_v24 = vshrl.u32 %v2713_v13, 16 }
  0x6e   : > { %1421 = vmatpush.bf16.msra.mxu3 %v2053_v14  ;;  %1470 = vmatpush.bf16.msra.mxu0 %v2061_v18  ;;  %v2710_v9 = vsel %vm303_vm0, %v394_v1, %v398_v2  ;;  %v448_v14 = vunpack.c.l.b16 %v227_v3 }
  0x6f   : > { %v455_v25 = vrot.slane %v453_v17, 1 }
  0x70   : > { %1373 = vmatpush.bf16.msra.mxu2 %v2044_v30  ;;  %1324 = vmatpush.bf16.msra.mxu1 %v2036_v40  ;;  %v2724_v16 = vpack.c.b16 %v448_v14, %v448_v14  ;;  %v431_v30 = vrot.slane %v302_v56, 1 }
  0x72   : > { %1422 = vmatpush.bf16.msra.mxu3 %v2052_v31  ;;  %1471 = vmatpush.bf16.msra.mxu0 %v2060_v43  ;;  %v458_v26 = vshll.u32 %v2724_v16, 16  ;;  %v456_v31 = vor.u32 %v455_v25, %v451_v24  ;;  %v2747_v43 = vsel %vm408_vm1, %v430_v29, %v431_v30 }
  0x74   : > { %1374 = vmatpush.bf16.msra.mxu2 %v2043_v52  ;;  %1325 = vmatpush.bf16.msra.mxu1 %v2035_v58  ;;  %v460_v36 = vrot.slane %v458_v26, 1 }
  0x76   : > { %1423 = vmatpush.bf16.msra.mxu3 %v2051_v53  ;;  %1472 = vmatpush.bf16.msra.mxu0 %v2059_v62  ;;  %v2750_v45 = vsel %vm303_vm0, %v456_v31, %v460_v36 }
  0x77   : > { %1140 = vmatmul.bf16.gmra.mxu1 %v2579_v39  ;;  %1189 = vmatmul.bf16.gmra.mxu2 %v2601_v54 }
  0x79   : > { %1238 = vmatmul.bf16.gmra.mxu3 %v2464_v32  ;;  %1287 = vmatmul.bf16.gmra.mxu0 %v2604_v55 }
  0x87   : > { %1145 = vmatmul.bf16.gmra.mxu1 %v2604_v55  ;;  %1194 = vmatmul.bf16.gmra.mxu2 %v2627_v7 }
  0x89   : > { %1243 = vmatmul.bf16.gmra.mxu3 %v2401_v11  ;;  %1292 = vmatmul.bf16.gmra.mxu0 %v2630_v8 }
  0x97   : > { %1150 = vmatmul.bf16.gmra.mxu1 %v2630_v8  ;;  %1199 = vmatmul.bf16.gmra.mxu2 %v2653_v27 }
  0x99   : > { %1248 = vmatmul.bf16.gmra.mxu3 %v2467_v33  ;;  %1297 = vmatmul.bf16.gmra.mxu0 %v2656_v28 }
  0xa7   : > { %1155 = vmatmul.bf16.gmra.mxu1 %v2656_v28  ;;  %1204 = vmatmul.bf16.gmra.mxu2 %v2679_v49 }
  0xa9   : > { %1253 = vmatmul.bf16.gmra.mxu3 %v2404_v12  ;;  %1302 = vmatmul.bf16.gmra.mxu0 %v2682_v50 }
  0xb4   : > { %v2704_v4 = vpop.f32.mrf.mxu1 }
  0xb6   : > { %v1082_v6 = vpop.f32.mrf.mxu0 }
  0xb7   : > { %1160 = vmatmul.bf16.gmra.mxu1 %v2682_v50  ;;  %1209 = vmatmul.bf16.gmra.mxu2 %v2707_v5  ;;  %v1083_v57 = vadd.f32 %v2722_v15, %v1082_v6 }
  0xb9   : > { %1258 = vmatmul.bf16.gmra.mxu3 %v2470_v34  ;;  %1307 = vmatmul.bf16.gmra.mxu0 %v2710_v9 }
  0xba   : > { %v1102_v18 = vpop.f32.mrf.mxu2 }
  0xbb   : > { %v2728_v19 = vadd.f32 %v2722_v15, %v1102_v18 }
  0xbc   : > { %v1112_v20 = vpop.f32.mrf.mxu3  ;;  %v2733_v22 = vpop.f32.mrf.mxu1 }
  0xbd   : > { %v2731_v21 = vadd.f32 %v2722_v15, %v1112_v20 }
  0xbe   : > { %v1084_v23 = vpop.f32.mrf.mxu0 }
  0xbf   : > { %v1085_v1 = vadd.f32 %v2722_v15, %v1084_v23 }
  0xc2   : > { %v1104_v37 = vpop.f32.mrf.mxu2 }
  0xc3   : > { %v2739_v40 = vadd.f32 %v2722_v15, %v1104_v37 }
  0xc4   : > { %v1114_v35 = vpop.f32.mrf.mxu3  ;;  %v2744_v42 = vpop.f32.mrf.mxu1 }
  0xc5   : > { %v2742_v41 = vadd.f32 %v2722_v15, %v1114_v35 }
  0xc6   : > { %v1087_v44 = vpop.f32.mrf.mxu0 }
  0xc7   : > { %1165 = vmatmul.bf16.gmra.mxu1 %v2710_v9  ;;  %1214 = vmatmul.bf16.gmra.mxu2 %v2747_v43 }
  0xc9   : > { %1263 = vmatmul.bf16.gmra.mxu3 %v2713_v13  ;;  %1312 = vmatmul.bf16.gmra.mxu0 %v2750_v45 }
  0xca   : > { %v1107_v46 = vpop.f32.mrf.mxu2 }
  0xcb   : > { %v2757_v47 = vadd.f32 %v2722_v15, %v1107_v46 }
  0xcc   : > { %v1117_v48 = vpop.f32.mrf.mxu3  ;;  %v2762_v52 = vpop.f32.mrf.mxu1 }
  0xcd   : > { %v2760_v51 = vadd.f32 %v2722_v15, %v1117_v48 }
  0xce   : > { %v1089_v53 = vpop.f32.mrf.mxu0 }
  0xcf   : > { %v1090_v36 = vadd.f32 %v2722_v15, %v1089_v53 }
  0xd2   : > { %v1109_v56 = vpop.f32.mrf.mxu2 }
  0xd3   : > { %v2766_v58 = vadd.f32 %v2722_v15, %v1109_v56 }
  0xd4   : > { %v1119_v59 = vpop.f32.mrf.mxu3  ;;  %v1131_v61 = vpop.f32.mrf.mxu1 }
  0xd5   : > { %v2769_v60 = vadd.f32 %v2722_v15, %v1119_v59  ;;  %v1132_v62 = vadd.f32 %v1131_v61, %v1083_v57 }
  0xd6   : > { %v1278_v63 = vpop.f32.mrf.mxu0 }
  0xd7   : > { %1326 = vmatmul.bf16.vlgmr.msra.gmra.mxu1 %v2576_v38  ;;  %1375 = vmatmul.bf16.vlgmr.msra.gmra.mxu2 %v2398_v10  ;;  %v1088_v38 = vadd.f32 %v2722_v15, %v1087_v44 }
  0xd9   : > { %1424 = vmatmul.bf16.vlgmr.msra.gmra.mxu3 %v2579_v39  ;;  %1473 = vmatmul.bf16.vlgmr.msra.gmra.mxu0 %v2601_v54 }
  0xda   : > { %v1180_v0 = vpop.f32.mrf.mxu2 }
  0xdb   : > { %v1181_v2 = vadd.f32 %v1180_v0, %v1132_v62 }
  0xdc   : > { %v1229_v3 = vpop.f32.mrf.mxu3  ;;  %v1133_v6 = vpop.f32.mrf.mxu1 }
  0xdd   : > { %v1230_v14 = vadd.f32 %v1229_v3, %v1181_v2  ;;  %v1134_v17 = vadd.f32 %v1133_v6, %v1085_v1 }
  0xde   : > { %v1280_v18 = vpop.f32.mrf.mxu0 }
  0xdf   : > { %v2776_v20 = vadd.f32 %v1278_v63, %v1230_v14 }
  0xe2   : > { %v1182_v24 = vpop.f32.mrf.mxu2 }
  0xe3   : > { %v1183_v25 = vadd.f32 %v1182_v24, %v1134_v17 }
  0xe4   : > { %v1231_v10 = vpop.f32.mrf.mxu3  ;;  %v1136_v26 = vpop.f32.mrf.mxu1 }
  0xe5   : > { %v1232_v39 = vadd.f32 %v1231_v10, %v1183_v25  ;;  %v1137_v29 = vadd.f32 %v1136_v26, %v1088_v38 }
  0xe6   : > { %v1283_v30 = vpop.f32.mrf.mxu0 }
  0xe7   : > { %1331 = vmatmul.bf16.gmra.mxu1 %v2601_v54  ;;  %1380 = vmatmul.bf16.gmra.mxu2 %v2464_v32  ;;  %v2781_v23 = vadd.f32 %v1280_v18, %v1232_v39  ;;  %v1093_v32 = vadd.f32 %v2722_v15, %v2704_v4  ;;  %v1095_v4 = vadd.f32 %v2722_v15, %v2733_v22 }
  0xe9   : > { %1429 = vmatmul.bf16.gmra.mxu3 %v2604_v55  ;;  %1478 = vmatmul.bf16.gmra.mxu0 %v2627_v7 }
  0xea   : > { %v1185_v31 = vpop.f32.mrf.mxu2 }
  0xeb   : > { %v1186_v37 = vadd.f32 %v1185_v31, %v1137_v29 }
  0xec   : > { %v1234_v35 = vpop.f32.mrf.mxu3  ;;  %v1138_v44 = vpop.f32.mrf.mxu1 }
  0xed   : > { %v1235_v46 = vadd.f32 %v1234_v35, %v1186_v37  ;;  %v1139_v48 = vadd.f32 %v1138_v44, %v1090_v36 }
  0xee   : > { %v1285_v56 = vpop.f32.mrf.mxu0 }
  0xef   : > { %v2786_v57 = vadd.f32 %v1283_v30, %v1235_v46 }
  0xf2   : > { %v1187_v54 = vpop.f32.mrf.mxu2 }
  0xf3   : > { %v1188_v59 = vadd.f32 %v1187_v54, %v1139_v48 }
  0xf4   : > { %v1236_v61 = vpop.f32.mrf.mxu3  ;;  %v1141_v55 = vpop.f32.mrf.mxu1 }
  0xf5   : > { %v1237_v62 = vadd.f32 %v1236_v61, %v1188_v59  ;;  %v1142_v63 = vadd.f32 %v1141_v55, %v1093_v32 }
  0xf6   : > { %v1288_v0 = vpop.f32.mrf.mxu0 }
  0xf7   : > { %1336 = vmatmul.bf16.gmra.mxu1 %v2627_v7  ;;  %1385 = vmatmul.bf16.gmra.mxu2 %v2401_v11  ;;  %v2792_v53 = vadd.f32 %v1285_v56, %v1237_v62  ;;  %v1098_v11 = vadd.f32 %v2722_v15, %v2744_v42  ;;  %v1100_v42 = vadd.f32 %v2722_v15, %v2762_v52 }
  0xf9   : > { %1434 = vmatmul.bf16.gmra.mxu3 %v2630_v8  ;;  %1483 = vmatmul.bf16.gmra.mxu0 %v2653_v27 }
  0xfa   : > { %v1190_v1 = vpop.f32.mrf.mxu2 }
  0xfb   : > { %v1191_v2 = vadd.f32 %v1190_v1, %v1142_v63 }
  0xfc   : > { %v1239_v3 = vpop.f32.mrf.mxu3  ;;  %v1143_v6 = vpop.f32.mrf.mxu1 }
  0xfd   : > { %v1240_v14 = vadd.f32 %v1239_v3, %v1191_v2  ;;  %v1144_v17 = vadd.f32 %v1143_v6, %v1095_v4 }
  0xfe   : > { %v1290_v18 = vpop.f32.mrf.mxu0 }
  0xff   : > { %v2798_v24 = vadd.f32 %v1288_v0, %v1240_v14 }
 0x102   : > { %v1192_v7 = vpop.f32.mrf.mxu2 }
 0x103   : > { %v1193_v38 = vadd.f32 %v1192_v7, %v1144_v17 }
 0x104   : > { %v1241_v8 = vpop.f32.mrf.mxu3  ;;  %v1146_v25 = vpop.f32.mrf.mxu1 }
 0x105   : > { %v1242_v10 = vadd.f32 %v1241_v8, %v1193_v38  ;;  %v1147_v26 = vadd.f32 %v1146_v25, %v1098_v11  ;;  %v230_v25 = vld [vmem:[%s2389_s20 + $0x74] sm:$0x1] }
 0x106   : > { %v1293_v39 = vpop.f32.mrf.mxu0 }
 0x107   : > { %1341 = vmatmul.bf16.gmra.mxu1 %v2653_v27  ;;  %1390 = vmatmul.bf16.gmra.mxu2 %v2467_v33  ;;  %v2804_v22 = vadd.f32 %v1290_v18, %v1242_v10 }
 0x109   : > { %1439 = vmatmul.bf16.gmra.mxu3 %v2656_v28  ;;  %1488 = vmatmul.bf16.gmra.mxu0 %v2679_v49 }
 0x10a   : > { %v1195_v29 = vpop.f32.mrf.mxu2 }
 0x10b   : > { %v1196_v30 = vadd.f32 %v1195_v29, %v1147_v26 }
 0x10c   : > { %v1244_v31 = vpop.f32.mrf.mxu3  ;;  %v1148_v36 = vpop.f32.mrf.mxu1 }
 0x10d   : > { %v1245_v37 = vadd.f32 %v1244_v31, %v1196_v30  ;;  %v1149_v35 = vadd.f32 %v1148_v36, %v1100_v42  ;;  %v1994_v31 = vld [vmem:[%s2389_s20 + $0x6c] sm:$0xff]  ;;  %s187_s20 = sand.u32 1, %s2237_s13  }
 0x10e   : > { %v1295_v44 = vpop.f32.mrf.mxu0  ;;  %s1648_s16 = sshll.u32 %s187_s20, 7  ;;  %s1547_s25 = scalar_lea.sflag [#allocation3], %s187_s20 }
 0x10f   : > { %v2810_v46 = vadd.f32 %v1293_v39, %v1245_v37  ;;  %v479_v37 = vshll.u32 %v1994_v31, 16  ;;  %s2861_s30 = scalar_lea.vmem [#allocation2], %s1648_s16 }
 0x110   : > { %s1561_s8 = sshll.u32 %s2861_s30, 4  ;;  %s1562_s8 = int_to_ptr.vmem [resolvable:$true] %s1561_s8 }
 0x112   : > { %v1197_v27 = vpop.f32.mrf.mxu2 }
 0x113   : > { %v1198_v33 = vadd.f32 %v1197_v27, %v1149_v35 }
 0x114   : > { %v1246_v48 = vpop.f32.mrf.mxu3  ;;  %v1151_v56 = vpop.f32.mrf.mxu1 }
 0x115   : > { %v1247_v54 = vadd.f32 %v1246_v48, %v1198_v33  ;;  %v1152_v28 = vadd.f32 %v1151_v56, %v2728_v19  ;;  %v477_v33 = vshrl.u32 %v1994_v31, 16 }
 0x116   : > { %v1298_v32 = vpop.f32.mrf.mxu0 }
 0x117   : > { %1346 = vmatmul.bf16.gmra.mxu1 %v2679_v49  ;;  %1395 = vmatmul.bf16.gmra.mxu2 %v2404_v12  ;;  %v2815_v15 = vadd.f32 %v1295_v44, %v1247_v54 }
 0x119   : > { %1444 = vmatmul.bf16.gmra.mxu3 %v2682_v50  ;;  %1493 = vmatmul.bf16.gmra.mxu0 %v2707_v5 }
 0x11a   : > { %v1200_v52 = vpop.f32.mrf.mxu2 }
 0x11b   : > { %v1201_v59 = vadd.f32 %v1200_v52, %v1152_v28  ;;  %v481_v28 = vrot.slane %v479_v37, 1 }
 0x11c   : > { %v1249_v61 = vpop.f32.mrf.mxu3  ;;  %v1153_v55 = vpop.f32.mrf.mxu1 }
 0x11d   : > { %v1250_v62 = vadd.f32 %v1249_v61, %v1201_v59  ;;  %v1154_v63 = vadd.f32 %v1153_v55, %v2739_v40  ;;  %v489_v59 = vrot.slane %v1994_v31, 1 }
 0x11e   : > { %v1300_v0 = vpop.f32.mrf.mxu0 }
 0x11f   : > { %v2820_v19 = vadd.f32 %v1298_v32, %v1250_v62 }
 0x122   : > { %v1202_v1 = vpop.f32.mrf.mxu2 }
 0x123   : > { %v1203_v49 = vadd.f32 %v1202_v1, %v1154_v63 }
 0x124   : > { %v1251_v4 = vpop.f32.mrf.mxu3  ;;  %v1156_v12 = vpop.f32.mrf.mxu1 }
 0x125   : > { %v1252_v2 = vadd.f32 %v1251_v4, %v1203_v49  ;;  %v1157_v3 = vadd.f32 %v1156_v12, %v2757_v47 }
 0x126   : > { %v1303_v50 = vpop.f32.mrf.mxu0 }
 0x127   : > { %1351 = vmatmul.bf16.gmra.mxu1 %v2707_v5  ;;  %1400 = vmatmul.bf16.gmra.mxu2 %v2470_v34  ;;  %v2825_v6 = vadd.f32 %v1300_v0, %v1252_v2  ;;  %v463_v5 = vrot.slane %v2713_v13, 1  ;;  %v464_v34 = vrot.slane %v2724_v16, 1 }
 0x129   : > { %1449 = vmatmul.bf16.gmra.mxu3 %v2710_v9  ;;  %1498 = vmatmul.bf16.gmra.mxu0 %v2747_v43  ;;  %v465_v30 = vsel %vm408_vm1, %v463_v5, %v464_v34 }
 0x12a   : > { %v1205_v40 = vpop.f32.mrf.mxu2 }
 0x12b   : > { %v1206_v14 = vadd.f32 %v1205_v40, %v1157_v3 }
 0x12c   : > { %v1254_v17 = vpop.f32.mrf.mxu3  ;;  %v1158_v18 = vpop.f32.mrf.mxu1 }
 0x12d   : > { %v1255_v7 = vadd.f32 %v1254_v17, %v1206_v14  ;;  %v1159_v47 = vadd.f32 %v1158_v18, %v2766_v58  ;;  %v474_v58 = vunpack.c.l.b16 %v230_v25 }
 0x12e   : > { %v1305_v11 = vpop.f32.mrf.mxu0 }
 0x12f   : > { %v2830_v38 = vadd.f32 %v1303_v50, %v1255_v7  ;;  %v475_v16 = vpack.c.b16 %v474_v58, %v474_v58 }
 0x132   : > { %v1207_v8 = vpop.f32.mrf.mxu2 }
 0x133   : > { %v1208_v9 = vadd.f32 %v1207_v8, %v1159_v47 }
 0x134   : > { %v1256_v10 = vpop.f32.mrf.mxu3  ;;  %v1161_v26 = vpop.f32.mrf.mxu1 }
 0x135   : > { %v1257_v39 = vadd.f32 %v1256_v10, %v1208_v9  ;;  %v1162_v29 = vadd.f32 %v1161_v26, %v2731_v21 }
 0x136   : > { %v1308_v42 = vpop.f32.mrf.mxu0 }
 0x137   : > { %1356 = vmatmul.bf16.gmra.mxu1 %v2747_v43  ;;  %1405 = vmatmul.bf16.gmra.mxu2 %v2713_v13  ;;  %v2840_v36 = vadd.f32 %v1305_v11, %v1257_v39  ;;  %v484_v43 = vshll.u32 %v475_v16, 16  ;;  %v482_v13 = vor.u32 %v481_v28, %v477_v33 }
 0x139   : > { %1454 = vmatmul.bf16.gmra.mxu3 %v2750_v45  ;;  %1503 = vmatmul.bf16.gmra.mxu0 %v465_v30  ;;  %v486_v52 = vrot.slane %v484_v43, 1  ;;  %v490_v45 = vrot.slane %v475_v16, 1 }
 0x13a   : > { %v1210_v35 = vpop.f32.mrf.mxu2 }
 0x13b   : > { %v1211_v44 = vadd.f32 %v1210_v35, %v1162_v29  ;;  %v487_v4 = vsel %vm303_vm0, %v482_v13, %v486_v52 }
 0x13c   : > { %v1259_v27 = vpop.f32.mrf.mxu3  ;;  %v1163_v21 = vpop.f32.mrf.mxu1 }
 0x13d   : > { %v1260_v48 = vadd.f32 %v1259_v27, %v1211_v44  ;;  %v1164_v56 = vadd.f32 %v1163_v21, %v2742_v41  ;;  %v491_v41 = vsel %vm408_vm1, %v489_v59, %v490_v45 }
 0x13e   : > { %v1310_v54 = vpop.f32.mrf.mxu0 }
 0x13f   : > { %v2844_v32 = vadd.f32 %v1308_v42, %v1260_v48 }
 0x142   : > { %v1212_v61 = vpop.f32.mrf.mxu2 }
 0x143   : > { %v1213_v55 = vadd.f32 %v1212_v61, %v1164_v56 }
 0x144   : > { %v1261_v62 = vpop.f32.mrf.mxu3  ;;  %v1166_v63 = vpop.f32.mrf.mxu1 }
 0x145   : > { %v1262_v0 = vadd.f32 %v1261_v62, %v1213_v55  ;;  %v1167_v1 = vadd.f32 %v1166_v63, %v2760_v51 }
 0x146   : > { %v1313_v49 = vpop.f32.mrf.mxu0 }
 0x147   : > { %1361 = vmatmul.bf16.gmra.mxu1 %v465_v30  ;;  %1410 = vmatmul.bf16.gmra.mxu2 %v1994_v31  ;;  %v2849_v12 = vadd.f32 %v1310_v54, %v1262_v0 }
 0x149   : > { %1459 = vmatmul.bf16.gmra.mxu3 %v487_v4  ;;  %1508 = vmatmul.bf16.gmra.mxu0 %v491_v41 }
 0x14a   : > { %v1215_v2 = vpop.f32.mrf.mxu2 }
 0x14b   : > { %v1216_v3 = vadd.f32 %v1215_v2, %v1167_v1 }
 0x14c   : > { %v1264_v50 = vpop.f32.mrf.mxu3  ;;  %v1168_v40 = vpop.f32.mrf.mxu1 }
 0x14d   : > { %v1265_v14 = vadd.f32 %v1264_v50, %v1216_v3  ;;  %v1169_v17 = vadd.f32 %v1168_v40, %v2769_v60 }
 0x14e   : > { %v1315_v51 = vpop.f32.mrf.mxu0 }
 0x14f   : > { %v2852_v18 = vadd.f32 %v1313_v49, %v1265_v14 }
 0x152   : > { %v1217_v7 = vpop.f32.mrf.mxu2 }
 0x153   : > { %v1218_v47 = vadd.f32 %v1217_v7, %v1169_v17 }
 0x154   : > { %v1266_v11 = vpop.f32.mrf.mxu3  ;;  %v1327_v5 = vpop.f32.mrf.mxu1 }
 0x155   : > { %v1267_v34 = vadd.f32 %v1266_v11, %v1218_v47  ;;  %v1328_v9 = vadd.f32 %v1327_v5, %v2776_v20 }
 0x156   : > { %v1474_v8 = vpop.f32.mrf.mxu0 }
 0x157   : > { %v2854_v25 = vadd.f32 %v1315_v51, %v1267_v34 }
 0x15a   : > { %v1376_v10 = vpop.f32.mrf.mxu2 }
 0x15b   : > { %v1377_v26 = vadd.f32 %v1376_v10, %v1328_v9 }
 0x15c   : > { %v1425_v39 = vpop.f32.mrf.mxu3  ;;  %v1329_v29 = vpop.f32.mrf.mxu1 }
 0x15d   : > { %v1426_v60 = vadd.f32 %v1425_v39, %v1377_v26  ;;  %v1330_v58 = vadd.f32 %v1329_v29, %v2781_v23 }
 0x15e   : > { %v1476_v42 = vpop.f32.mrf.mxu0 }
 0x15f   : > { %v1475_v30 = vadd.f32 %v1474_v8, %v1426_v60 }
 0x161   : > { %v1514_v31 = vmax.f32 %v1475_v30, 0.0 }
 0x162   : > { %v1378_v16 = vpop.f32.mrf.mxu2 }
 0x163   : > { %1530 = vst [vmem:[%s2861_s30] sm:$0xff] %v1514_v31  ;;  %v1379_v20 = vadd.f32 %v1378_v16, %v1330_v58 }
 0x164   : > { %v1427_v37 = vpop.f32.mrf.mxu3  ;;  %v1332_v35 = vpop.f32.mrf.mxu1 }
 0x165   : > { %v1428_v44 = vadd.f32 %v1427_v37, %v1379_v20  ;;  %v1333_v48 = vadd.f32 %v1332_v35, %v2786_v57 }
 0x166   : > { %v1479_v27 = vpop.f32.mrf.mxu0 }
 0x167   : > { %v1477_v21 = vadd.f32 %v1476_v42, %v1428_v44 }
 0x169   : > { %v1515_v33 = vmax.f32 %v1477_v21, 0.0 }
 0x16a   : > { %v1381_v56 = vpop.f32.mrf.mxu2 }
 0x16b   : > { %1531 = vst [vmem:[%s2861_s30 + $0x8] sm:$0xff] %v1515_v33  ;;  %v1382_v54 = vadd.f32 %v1381_v56, %v1333_v48 }
 0x16c   : > { %v1430_v23 = vpop.f32.mrf.mxu3  ;;  %v1334_v28 = vpop.f32.mrf.mxu1 }
 0x16d   : > { %v1431_v43 = vadd.f32 %v1430_v23, %v1382_v54  ;;  %v1335_v45 = vadd.f32 %v1334_v28, %v2792_v53 }
 0x16e   : > { %v1481_v13 = vpop.f32.mrf.mxu0 }
 0x16f   : > { %v1480_v52 = vadd.f32 %v1479_v27, %v1431_v43 }
 0x171   : > { %v1516_v59 = vmax.f32 %v1480_v52, 0.0 }
 0x172   : > { %v1383_v61 = vpop.f32.mrf.mxu2 }
 0x173   : > { %1532 = vst [vmem:[%s2861_s30 + $0x10] sm:$0xff] %v1516_v59  ;;  %v1384_v55 = vadd.f32 %v1383_v61, %v1335_v45 }
 0x174   : > { %v1432_v62 = vpop.f32.mrf.mxu3  ;;  %v1337_v63 = vpop.f32.mrf.mxu1 }
 0x175   : > { %v1433_v0 = vadd.f32 %v1432_v62, %v1384_v55  ;;  %v1338_v4 = vadd.f32 %v1337_v63, %v2798_v24 }
 0x176   : > { %v1484_v57 = vpop.f32.mrf.mxu0 }
 0x177   : > { %v1482_v1 = vadd.f32 %v1481_v13, %v1433_v0 }
 0x179   : > { %v1517_v49 = vmax.f32 %v1482_v1, 0.0 }
 0x17a   : > { %v1386_v41 = vpop.f32.mrf.mxu2 }
 0x17b   : > { %1533 = vst [vmem:[%s2861_s30 + $0x18] sm:$0xff] %v1517_v49  ;;  %v1387_v2 = vadd.f32 %v1386_v41, %v1338_v4 }
 0x17c   : > { %v1435_v3 = vpop.f32.mrf.mxu3  ;;  %v1339_v50 = vpop.f32.mrf.mxu1 }
 0x17d   : > { %v1436_v40 = vadd.f32 %v1435_v3, %v1387_v2  ;;  %v1340_v51 = vadd.f32 %v1339_v50, %v2804_v22 }
 0x17e   : > { %v1486_v53 = vpop.f32.mrf.mxu0 }
 0x17f   : > { %v1485_v14 = vadd.f32 %v1484_v57, %v1436_v40 }
 0x181   : > { %v1518_v17 = vmax.f32 %v1485_v14, 0.0 }
 0x182   : > { %v1388_v7 = vpop.f32.mrf.mxu2 }
 0x183   : > { %1534 = vst [vmem:[%s2861_s30 + $0x20] sm:$0xff] %v1518_v17  ;;  %v1389_v47 = vadd.f32 %v1388_v7, %v1340_v51 }
 0x184   : > { %v1437_v11 = vpop.f32.mrf.mxu3  ;;  %v1342_v5 = vpop.f32.mrf.mxu1 }
 0x185   : > { %v1438_v34 = vadd.f32 %v1437_v11, %v1389_v47  ;;  %v1343_v10 = vadd.f32 %v1342_v5, %v2810_v46 }
 0x186   : > { %v1489_v24 = vpop.f32.mrf.mxu0 }
 0x187   : > { %v1487_v8 = vadd.f32 %v1486_v53, %v1438_v34 }
 0x189   : > { %v1519_v9 = vmax.f32 %v1487_v8, 0.0 }
 0x18a   : > { %v1391_v26 = vpop.f32.mrf.mxu2 }
 0x18b   : > { %1535 = vst [vmem:[%s2861_s30 + $0x28] sm:$0xff] %v1519_v9  ;;  %v1392_v39 = vadd.f32 %v1391_v26, %v1343_v10 }
 0x18c   : > { %v1440_v29 = vpop.f32.mrf.mxu3  ;;  %v1344_v60 = vpop.f32.mrf.mxu1 }
 0x18d   : > { %v1441_v42 = vadd.f32 %v1440_v29, %v1392_v39  ;;  %v1345_v58 = vadd.f32 %v1344_v60, %v2815_v15 }
 0x18e   : > { %v1491_v22 = vpop.f32.mrf.mxu0 }
 0x18f   : > { %v1490_v30 = vadd.f32 %v1489_v24, %v1441_v42 }
 0x191   : > { %v1520_v31 = vmax.f32 %v1490_v30, 0.0 }
 0x192   : > { %v1393_v16 = vpop.f32.mrf.mxu2 }
 0x193   : > { %1536 = vst [vmem:[%s2861_s30 + $0x30] sm:$0xff] %v1520_v31  ;;  %v1394_v20 = vadd.f32 %v1393_v16, %v1345_v58 }
 0x194   : > { %v1442_v37 = vpop.f32.mrf.mxu3  ;;  %v1347_v35 = vpop.f32.mrf.mxu1 }
 0x195   : > { %v1443_v44 = vadd.f32 %v1442_v37, %v1394_v20  ;;  %v1348_v33 = vadd.f32 %v1347_v35, %v2820_v19 }
 0x196   : > { %v1494_v46 = vpop.f32.mrf.mxu0 }
 0x197   : > { %v1492_v27 = vadd.f32 %v1491_v22, %v1443_v44 }
 0x199   : > { %v1521_v21 = vmax.f32 %v1492_v27, 0.0 }
 0x19a   : > { %v1396_v48 = vpop.f32.mrf.mxu2 }
 0x19b   : > { %1537 = vst [vmem:[%s2861_s30 + $0x38] sm:$0xff] %v1521_v21  ;;  %v1397_v56 = vadd.f32 %v1396_v48, %v1348_v33 }
 0x19c   : > { %v1445_v54 = vpop.f32.mrf.mxu3  ;;  %v1349_v23 = vpop.f32.mrf.mxu1 }
 0x19d   : > { %v1446_v28 = vadd.f32 %v1445_v54, %v1397_v56  ;;  %v1350_v52 = vadd.f32 %v1349_v23, %v2825_v6 }
 0x19e   : > { %v1496_v15 = vpop.f32.mrf.mxu0 }
 0x19f   : > { %v1495_v43 = vadd.f32 %v1494_v46, %v1446_v28 }
 0x1a1   : > { %v1522_v13 = vmax.f32 %v1495_v43, 0.0 }
 0x1a2   : > { %v1398_v59 = vpop.f32.mrf.mxu2 }
 0x1a3   : > { %1538 = vst [vmem:[%s2861_s30 + $0x40] sm:$0xff] %v1522_v13  ;;  %v1399_v45 = vadd.f32 %v1398_v59, %v1350_v52 }
 0x1a4   : > { %v1447_v61 = vpop.f32.mrf.mxu3  ;;  %v1352_v55 = vpop.f32.mrf.mxu1 }
 0x1a5   : > { %v1448_v62 = vadd.f32 %v1447_v61, %v1399_v45  ;;  %v1353_v57 = vadd.f32 %v1352_v55, %v2830_v38 }
 0x1a6   : > { %v1499_v19 = vpop.f32.mrf.mxu0 }
 0x1a7   : > { %v1497_v63 = vadd.f32 %v1496_v15, %v1448_v62 }
 0x1a9   : > { %v1523_v0 = vmax.f32 %v1497_v63, 0.0 }
 0x1aa   : > { %v1401_v1 = vpop.f32.mrf.mxu2 }
 0x1ab   : > { %1539 = vst [vmem:[%s2861_s30 + $0x48] sm:$0xff] %v1523_v0  ;;  %v1402_v49 = vadd.f32 %v1401_v1, %v1353_v57 }
 0x1ac   : > { %v1450_v4 = vpop.f32.mrf.mxu3  ;;  %v1354_v41 = vpop.f32.mrf.mxu1 }
 0x1ad   : > { %v1451_v2 = vadd.f32 %v1450_v4, %v1402_v49  ;;  %v1355_v40 = vadd.f32 %v1354_v41, %v2840_v36 }
 0x1ae   : > { %v1501_v6 = vpop.f32.mrf.mxu0 }
 0x1af   : > { %v1500_v3 = vadd.f32 %v1499_v19, %v1451_v2 }
 0x1b1   : > { %v1524_v50 = vmax.f32 %v1500_v3, 0.0 }
 0x1b2   : > { %v1403_v53 = vpop.f32.mrf.mxu2 }
 0x1b3   : > { %1540 = vst [vmem:[%s2861_s30 + $0x50] sm:$0xff] %v1524_v50  ;;  %v1404_v14 = vadd.f32 %v1403_v53, %v1355_v40 }
 0x1b4   : > { %v1452_v17 = vpop.f32.mrf.mxu3  ;;  %v1357_v51 = vpop.f32.mrf.mxu1 }
 0x1b5   : > { %v1453_v7 = vadd.f32 %v1452_v17, %v1404_v14  ;;  %v1358_v5 = vadd.f32 %v1357_v51, %v2844_v32 }
 0x1b6   : > { %v1504_v47 = vpop.f32.mrf.mxu0 }
 0x1b7   : > { %v1502_v38 = vadd.f32 %v1501_v6, %v1453_v7 }
 0x1b9   : > { %v1525_v11 = vmax.f32 %v1502_v38, 0.0 }
 0x1ba   : > { %v1406_v34 = vpop.f32.mrf.mxu2 }
 0x1bb   : > { %1541 = vst [vmem:[%s2861_s30 + $0x58] sm:$0xff] %v1525_v11  ;;  %v1407_v24 = vadd.f32 %v1406_v34, %v1358_v5 }
 0x1bc   : > { %v1455_v8 = vpop.f32.mrf.mxu3  ;;  %v1359_v9 = vpop.f32.mrf.mxu1 }
 0x1bd   : > { %v1456_v10 = vadd.f32 %v1455_v8, %v1407_v24  ;;  %v1360_v39 = vadd.f32 %v1359_v9, %v2849_v12 }
 0x1be   : > { %v1506_v29 = vpop.f32.mrf.mxu0 }
 0x1bf   : > { %v1505_v36 = vadd.f32 %v1504_v47, %v1456_v10 }
 0x1c1   : > { %v1526_v26 = vmax.f32 %v1505_v36, 0.0 }
 0x1c2   : > { %v1408_v60 = vpop.f32.mrf.mxu2 }
 0x1c3   : > { %1542 = vst [vmem:[%s2861_s30 + $0x60] sm:$0xff] %v1526_v26  ;;  %v1409_v42 = vadd.f32 %v1408_v60, %v1360_v39 }
 0x1c4   : > { %v1457_v22 = vpop.f32.mrf.mxu3  ;;  %v1362_v30 = vpop.f32.mrf.mxu1 }
 0x1c5   : > { %v1458_v31 = vadd.f32 %v1457_v22, %v1409_v42  ;;  %v1363_v16 = vadd.f32 %v1362_v30, %v2852_v18 }
 0x1c6   : > { %v1509_v44 = vpop.f32.mrf.mxu0 }
 0x1c7   : > { %v1507_v32 = vadd.f32 %v1506_v29, %v1458_v31 }
 0x1c9   : > { %v1527_v58 = vmax.f32 %v1507_v32, 0.0 }
 0x1ca   : > { %v1411_v20 = vpop.f32.mrf.mxu2 }
 0x1cb   : > { %1543 = vst [vmem:[%s2861_s30 + $0x68] sm:$0xff] %v1527_v58  ;;  %v1412_v37 = vadd.f32 %v1411_v20, %v1363_v16 }
 0x1cc   : > { %v1460_v35 = vpop.f32.mrf.mxu3  ;;  %v1364_v46 = vpop.f32.mrf.mxu1 }
 0x1cd   : > { %v1461_v12 = vadd.f32 %v1460_v35, %v1412_v37  ;;  %v1365_v33 = vadd.f32 %v1364_v46, %v2854_v25 }
 0x1ce   : > { %v1511_v23 = vpop.f32.mrf.mxu0 }
 0x1cf   : > { %v1510_v27 = vadd.f32 %v1509_v44, %v1461_v12 }
 0x1d1   : > { %v1528_v21 = vmax.f32 %v1510_v27, 0.0 }
 0x1d2   : > { %v1413_v48 = vpop.f32.mrf.mxu2 }
 0x1d3   : > { %1544 = vst [vmem:[%s2861_s30 + $0x70] sm:$0xff] %v1528_v21  ;;  %v1414_v18 = vadd.f32 %v1413_v48, %v1365_v33 }
 0x1d4   : > { %v1462_v56 = vpop.f32.mrf.mxu3 }
 0x1d5   : > { %v1463_v54 = vadd.f32 %v1462_v56, %v1414_v18 }
 0x1d7   : > { %v1512_v28 = vadd.f32 %v1511_v23, %v1463_v54 }
 0x1d9   : > { %v1529_v15 = vmax.f32 %v1512_v28, 0.0 }
 0x1db   : > { %1545 = vst [vmem:[%s2861_s30 + $0x78] sm:$0xff] %v1529_v15 }
 0x1dc   : > { %2194 = shalt.err (!%p2191_p6)
}
 0x1dd   : > { %s2263_s20 = smov 128   ;;  %s2264_s30 = smov 8  }
 0x1de   : > { %2093 = dma.vmem_to_hbm [thread:$0]  (%p2338_p5), %s1562_s8, 2048, %s1564_s9, %s1547_s25, %s2263_s20, %s2263_s20, %s2264_s30  }
 0x1df PF: > { %p2099_p8 = scmp.ge.s32.totalorder %s2261_s19, 2  ;;  %s1578_s4 = sand.u32 1, %s2233_s12  }
 0x1e0   : > { %s1579_s15 = scalar_lea.sflag [#allocation3], %s1578_s4 }
 0x1e1   : > { %p2096_p9 = pnand %p2099_p8, %p2344_p7 }
 0x1e3   : > { %p2097_p10 = pneg %p2096_p9 }
 0x1e5   : > { %2228 = dma.done.wait (%p2097_p10), %s1579_s15, 2048  }
 0x1e6   : > { %2230 = vsyncadd (%p2097_p10), %s1579_s15, 4294965248  ;;  %s16_s19 = sadd.s32 1, %s2261_s19   ;;  %s2944_s12 = smov %s2237_s13 }
 0x1e7   : > { %p13_p11 = scmp.ge.s32.totalorder %s16_s19, 6   ;;  %s2945_s13 = smov %s2241_s14 }
 0x1e8   : > { %s2946_s14 = smov %s2354_s5  ;;  %s2947_s15 = smov %s2253_s17 }
 0x1e9   : > { %s2948_s16 = smov %s2257_s18  ;;  %s2949_s17 = smov %s2952_s21 }
 0x1ea   : > { %s2950_s18 = smov %s2956_s22  ;;  %15 = sbr.rel (!%p13_p11) target bundleno = 5 (0x5), region = 67 }
 0x1ef   :  { %1585 = vsyncpa [#allocation3], 1 }
 0x1f0   :  { %1587 = vsyncpa [#allocation3 + $0x1], 1 }

</bundles_post_ra>
